<compile_context>
chip_gen: v7x
topology: tpu7x:2x2x1
jax: 0.10.0
libtpu: 0.0.40
codegen_flags: <defaults>
</compile_context>

<pallas_src>
import functools

import numpy as np
import jax
import jax.numpy as jnp
from jax import lax
from jax.experimental import pallas as pl
from jax.experimental.pallas import tpu as pltpu


def _layernorm_rows(z, g, b, eps, out_dtype):
    """LayerNorm over the last axis of a (rows, embed) f32 tile."""
    mean = jnp.mean(z, axis=-1, keepdims=True)
    var = jnp.mean(z * z, axis=-1, keepdims=True) - mean * mean
    inv = lax.rsqrt(var + eps)
    return ((z - mean) * inv * g + b).astype(out_dtype)


def _addnorm_eval_kernel(x_ref, y_ref, g_ref, b_ref, o_ref, *, eps):
    """LayerNorm(x + y) for one (tile_rows, embed) block (dropout disabled)."""
    z = x_ref[...].astype(jnp.float32) + y_ref[...].astype(jnp.float32)
    o_ref[...] = _layernorm_rows(z, g_ref[...], b_ref[...], eps, o_ref.dtype)


def _addnorm_dropout_kernel(x_ref, y_ref, bits_ref, g_ref, b_ref, o_ref, *,
                            eps, thresh, scale):
    """LayerNorm(x + dropout(y)); keep iff bits >= thresh, fused 1/(1-p) scale."""
    keep = bits_ref[...] >= jnp.uint32(thresh)
    y = jnp.where(keep, y_ref[...].astype(jnp.float32) * scale, 0.0)
    z = x_ref[...].astype(jnp.float32) + y
    o_ref[...] = _layernorm_rows(z, g_ref[...], b_ref[...], eps, o_ref.dtype)


def _pick_tile_rows(rows, embed, itemsize, with_bits):
    """Largest row tile whose double-buffered streams + f32 temps fit a safe VMEM budget."""
    align = 8 if itemsize >= 4 else 16
    # Pipelined (double-buffered) streams per row: x, y, out (+ uint32 bits).
    stream = embed * (3 * itemsize + (4 if with_bits else 0))
    # In-kernel f32 intermediates (z and a couple of temps), single-buffered.
    interm = embed * 4 * 3
    budget = 16 * 1024 * 1024  # conservative: fits scoped VMEM on v5e/v6e/v7x
    tile = max(align, (budget // (2 * stream + interm)) // align * align)
    tile = min(tile, 1024)
    rows_aligned = ((rows + align - 1) // align) * align
    return min(tile, rows_aligned)


def add_norm(x, y, gamma, beta, *, p=0.1, training=False, key=None, eps=1e-5):
    """LayerNorm(x + dropout_p(y)) with normalization over the last dim."""
    assert x.shape == y.shape
    embed = x.shape[-1]
    rows = int(np.prod(x.shape[:-1]))
    use_dropout = bool(training) and float(p) > 0.0
    if use_dropout:
        assert 0.0 < float(p) < 1.0, "training dropout requires 0 < p < 1"
        assert key is not None, "training dropout requires a PRNG key"

    x2 = x.reshape(rows, embed)
    y2 = y.reshape(rows, embed)
    g2 = gamma.reshape(1, embed).astype(jnp.float32)
    b2 = beta.reshape(1, embed).astype(jnp.float32)

    itemsize = max(jnp.dtype(x.dtype).itemsize, jnp.dtype(y.dtype).itemsize)
    tile_r = _pick_tile_rows(rows, embed, itemsize, use_dropout)
    n_tiles = pl.cdiv(rows, tile_r)
    rows_p = n_tiles * tile_r
    if rows_p != rows:  # pad partial last tile (rows are independent under LN)
        pad = rows_p - rows
        x2 = jnp.pad(x2, ((0, pad), (0, 0)))
        y2 = jnp.pad(y2, ((0, pad), (0, 0)))

    row_spec = pl.BlockSpec((tile_r, embed), lambda i: (i, 0))   # lane-dense embed
    par_spec = pl.BlockSpec((1, embed), lambda i: (0, 0))        # stays VMEM-resident

    compiler_params = pltpu.CompilerParams(
        dimension_semantics=("parallel",),        # v7x megacore; no-op on v5e/v6e
        vmem_limit_bytes=48 * 1024 * 1024,        # safe on 64 MiB v7x VMEM
    )

    if use_dropout:
        # torch-style inverted dropout: keep w.p. (1-p), scale kept values by 1/(1-p).
        thresh = min(int(round(float(p) * 2**32)), 2**32 - 1)
        scale = 1.0 / (1.0 - float(p))
        # TODO(synk): RNG stream differs from torch.nn.Dropout (statistically
        # equivalent Bernoulli mask, not bit-identical to PyTorch's generator).
        bits = jax.random.bits(key, x.shape, dtype=jnp.uint32).reshape(rows, embed)
        if rows_p != rows:
            bits = jnp.pad(bits, ((0, rows_p - rows), (0, 0)))
        kernel = functools.partial(_addnorm_dropout_kernel, eps=float(eps),
                                   thresh=thresh, scale=scale)
        out = pl.pallas_call(
            kernel,
            out_shape=jax.ShapeDtypeStruct((rows_p, embed), x.dtype),
            grid=(n_tiles,),
            in_specs=[row_spec, row_spec, row_spec, par_spec, par_spec],
            out_specs=row_spec,
            compiler_params=compiler_params,
        )(x2, y2, bits, g2, b2)
    else:
        kernel = functools.partial(_addnorm_eval_kernel, eps=float(eps))
        out = pl.pallas_call(
            kernel,
            out_shape=jax.ShapeDtypeStruct((rows_p, embed), x.dtype),
            grid=(n_tiles,),
            in_specs=[row_spec, row_spec, par_spec, par_spec],
            out_specs=row_spec,
            compiler_params=compiler_params,
        )(x2, y2, g2, b2)

    return out[:rows].reshape(x.shape)


def add_norm_ref(x, y, gamma, beta, eps=1e-5):
    """Pure-JAX reference: LayerNorm(x + y) over the last axis."""
    z = (x.astype(jnp.float32) + y.astype(jnp.float32))
    mean = jnp.mean(z, axis=-1, keepdims=True)
    var = jnp.mean((z - mean) ** 2, axis=-1, keepdims=True)
    return ((z - mean) * lax.rsqrt(var + eps) * gamma + beta).astype(x.dtype)


def add_norm_train_ref(x, y, gamma, beta, key, p, eps=1e-5):
    """Pure-JAX reference for training mode using the same bit stream as the kernel."""
    thresh = min(int(round(float(p) * 2**32)), 2**32 - 1)
    scale = 1.0 / (1.0 - float(p))
    bits = jax.random.bits(key, x.shape, dtype=jnp.uint32)
    y_d = jnp.where(bits >= jnp.uint32(thresh), y.astype(jnp.float32) * scale, 0.0)
    return add_norm_ref(x, y_d.astype(y.dtype), gamma, beta, eps)


if __name__ == "__main__":
    key = jax.random.PRNGKey(0)
    kx, ky, kg, kb, kd = jax.random.split(key, 5)

    batch, seq, embed = 2, 8, 32
    x = jax.random.normal(kx, (batch, seq, embed), dtype=jnp.float32)
    y = jax.random.normal(ky, (batch, seq, embed), dtype=jnp.float32)

    # nn.LayerNorm(embed_size) params; perturb from the default ones/zeros so the
    # affine path is actually exercised.
    gamma = 1.0 + 0.1 * jax.random.normal(kg, (embed,), dtype=jnp.float32)
    beta = 0.1 * jax.random.normal(kb, (embed,), dtype=jnp.float32)

    # Eval mode (dropout = identity): deterministic check against the JAX reference.
    out = jax.block_until_ready(add_norm(x, y, gamma, beta, p=0.1, training=False))
    ref = add_norm_ref(x, y, gamma, beta)
    np.testing.assert_allclose(np.asarray(out), np.asarray(ref), rtol=2e-5, atol=2e-5)

    # Training mode: dropout mask comes from precomputed random bits, so the result
    # is deterministic given the key and checkable against a matching JAX reference.
    p = 0.1
    out_tr = jax.block_until_ready(
        add_norm(x, y, gamma, beta, p=p, training=True, key=kd))
    ref_tr = add_norm_train_ref(x, y, gamma, beta, kd, p)
    np.testing.assert_allclose(np.asarray(out_tr), np.asarray(ref_tr),
                               rtol=2e-5, atol=2e-5)

    print("KERNEL_OK")
</pallas_src>

<mosaic_0001>
module attributes {stable_mosaic.version = 11 : i64} {
  func.func @_addnorm_eval_kernel(%arg0: i32, %arg1: memref<16x32xf32, #tpu.memory_space<vmem>>, %arg2: memref<16x32xf32, #tpu.memory_space<vmem>>, %arg3: memref<1x32xf32, #tpu.memory_space<vmem>>, %arg4: memref<1x32xf32, #tpu.memory_space<vmem>>, %arg5: memref<16x32xf32, #tpu.memory_space<vmem>>) attributes {dimension_semantics = [#tpu.dimension_semantics<parallel>], iteration_bounds = array<i64: 1>, scalar_prefetch = 0 : i64, scratch_operands = 0 : i64, tpu.core_type = #tpu.core_type<tc>, window_params = [{transform_indices = @transform_0, window_bounds = array<i64: 16, 32>}, {transform_indices = @transform_1, window_bounds = array<i64: 16, 32>}, {pipeline_mode = #tpu.pipeline_mode<synchronous>, transform_indices = @transform_2, window_bounds = array<i64: 1, 32>}, {pipeline_mode = #tpu.pipeline_mode<synchronous>, transform_indices = @transform_3, window_bounds = array<i64: 1, 32>}, {transform_indices = @transform_4, window_bounds = array<i64: 16, 32>}]} {
    %c0 = arith.constant 0 : index
    %c0_0 = arith.constant 0 : index
    %0 = vector.load %arg1[%c0, %c0_0] : memref<16x32xf32, #tpu.memory_space<vmem>>, vector<16x32xf32>
    %c0_1 = arith.constant 0 : index
    %c0_2 = arith.constant 0 : index
    %1 = vector.load %arg2[%c0_1, %c0_2] : memref<16x32xf32, #tpu.memory_space<vmem>>, vector<16x32xf32>
    %2 = arith.addf %0, %1 : vector<16x32xf32>
    %c0_3 = arith.constant 0 : index
    %c0_4 = arith.constant 0 : index
    %3 = vector.load %arg3[%c0_3, %c0_4] : memref<1x32xf32, #tpu.memory_space<vmem>>, vector<1x32xf32>
    %c0_5 = arith.constant 0 : index
    %c0_6 = arith.constant 0 : index
    %4 = vector.load %arg4[%c0_5, %c0_6] : memref<1x32xf32, #tpu.memory_space<vmem>>, vector<1x32xf32>
    %cst = arith.constant dense<0.000000e+00> : vector<16xf32>
    %5 = vector.multi_reduction <add>, %2, %cst [1] : vector<16x32xf32> to vector<16xf32>
    %6 = vector.shape_cast %5 : vector<16xf32> to vector<16x1xf32>
    %cst_7 = arith.constant 3.200000e+01 : f32
    %7 = vector.broadcast %cst_7 : f32 to vector<16x1xf32>
    %8 = arith.divf %6, %7 : vector<16x1xf32>
    %9 = arith.mulf %2, %2 : vector<16x32xf32>
    %cst_8 = arith.constant dense<0.000000e+00> : vector<16xf32>
    %10 = vector.multi_reduction <add>, %9, %cst_8 [1] : vector<16x32xf32> to vector<16xf32>
    %11 = vector.shape_cast %10 : vector<16xf32> to vector<16x1xf32>
    %cst_9 = arith.constant 3.200000e+01 : f32
    %12 = vector.broadcast %cst_9 : f32 to vector<16x1xf32>
    %13 = arith.divf %11, %12 : vector<16x1xf32>
    %14 = arith.mulf %8, %8 : vector<16x1xf32>
    %15 = arith.subf %13, %14 : vector<16x1xf32>
    %cst_10 = arith.constant 9.99999974E-6 : f32
    %16 = vector.broadcast %cst_10 : f32 to vector<16x1xf32>
    %17 = arith.addf %15, %16 : vector<16x1xf32>
    %18 = math.rsqrt %17 : vector<16x1xf32>
    %19 = vector.broadcast %8 : vector<16x1xf32> to vector<16x32xf32>
    %20 = arith.subf %2, %19 : vector<16x32xf32>
    %21 = vector.broadcast %18 : vector<16x1xf32> to vector<16x32xf32>
    %22 = arith.mulf %20, %21 : vector<16x32xf32>
    %23 = vector.broadcast %3 : vector<1x32xf32> to vector<16x32xf32>
    %24 = arith.mulf %22, %23 : vector<16x32xf32>
    %25 = vector.broadcast %4 : vector<1x32xf32> to vector<16x32xf32>
    %26 = arith.addf %24, %25 : vector<16x32xf32>
    %c0_11 = arith.constant 0 : index
    %c0_12 = arith.constant 0 : index
    %27 = vector.load %arg5[%c0_11, %c0_12] : memref<16x32xf32, #tpu.memory_space<vmem>>, vector<16x32xf32>
    tpu.vector_store %arg5[%c0_11, %c0_12], %26 {strides = array<i32>} : memref<16x32xf32, #tpu.memory_space<vmem>>, vector<16x32xf32>,
    return
  }
  func.func @transform_0(%arg0: i32) -> (i32, i32) {
    %c0_i32 = arith.constant 0 : i32
    %c0_i32_0 = arith.constant 0 : i32
    return %arg0, %c0_i32 : i32, i32
  }
  func.func @transform_1(%arg0: i32) -> (i32, i32) {
    %c0_i32 = arith.constant 0 : i32
    %c0_i32_0 = arith.constant 0 : i32
    return %arg0, %c0_i32 : i32, i32
  }
  func.func @transform_2(%arg0: i32) -> (i32, i32) {
    %c0_i32 = arith.constant 0 : i32
    %c0_i32_0 = arith.constant 0 : i32
    %c0_i32_1 = arith.constant 0 : i32
    return %c0_i32, %c0_i32_0 : i32, i32
  }
  func.func @transform_3(%arg0: i32) -> (i32, i32) {
    %c0_i32 = arith.constant 0 : i32
    %c0_i32_0 = arith.constant 0 : i32
    %c0_i32_1 = arith.constant 0 : i32
    return %c0_i32, %c0_i32_0 : i32, i32
  }
  func.func @transform_4(%arg0: i32) -> (i32, i32) {
    %c0_i32 = arith.constant 0 : i32
    %c0_i32_0 = arith.constant 0 : i32
    return %arg0, %c0_i32 : i32, i32
  }
}

</mosaic_0001>

<bundles_post_ra>
// kernel: tpu_custom_call.1
= control target key start
LH: loop header
LB: loop body
LE: loop exit
PB: predicated region body
PF: predicated region fallthrough
CT: control target
= control target key end

     0   :  { %9 = vsyncpa [#allocation3], 0  ;;  %s292_s0 = inlined_call_operand.hbm [shape: f32[16,32], index: 0, kind: input, shape index: {}]   ;;  %s293_s1 = inlined_call_operand.hbm [shape: f32[16,32], index: 1, kind: input, shape index: {}]   ;;  %s294_s2 = inlined_call_operand.vmem [shape: f32[1,32], index: 2, kind: input, shape index: {}]   ;;  %s295_s3 = inlined_call_operand.vmem [shape: f32[1,32], index: 3, kind: input, shape index: {}]   ;;  %s296_s4 = inlined_call_operand.hbm [shape: f32[16,32], index: 4, kind: output, shape index: {}]  }
   0x1   :  { %10 = vsyncpa [#allocation6], 0 }
   0x2   :  { %11 = vsyncpa [#allocation4], 0  ;;  %s205_s15 = smov [#allocation2]   ;;  %s133_s19 = scalar_lea.hbm %s292_s0, 256 }
   0x3   :  { %s17_s16 = sshll.u32 %s205_s15, 4  ;;  %p134_p0 = scmp.ne.s32.totalorder %s292_s0, %s133_s19  ;;  %s18_s16 = int_to_ptr.vmem [resolvable:$true] %s17_s16 }
   0x4   :  { %p137_p1 = scmp.lt.u32.totalorder %s133_s19, %s292_s0 }
   0x6   :  { %p139_p2 = pnand %p137_p1, %p134_p0 }
   0x8   :  { %142 = shalt.err (!%p139_p2)
}
   0x9   :  { %s143_s24 = scalar_lea.vmem %s18_s16, 256  ;;  %p148_p4 = scmp.lt.s32.totalorder %s18_s16, %s18_s16 }
   0xa   :  { %p144_p3 = scmp.ne.s32.totalorder %s18_s16, %s143_s24  ;;  %p149_p5 = scmp.lt.s32.totalorder %s143_s24, %s143_s24 }
   0xc   :  { %p150_p6 = por %p149_p5, %p148_p4 }
   0xe   :  { %p151_p7 = pnand %p150_p6, %p144_p3 }
  0x10   :  { %154 = shalt.err (!%p151_p7)
}
  0x11   :  { %s206_s25 = smov 128   ;;  %s207_s26 = smov 8  }
  0x12   :  { %23 = dma.hbm_to_vmem [thread:$0]  %s292_s0, 256, %s18_s16, [#allocation3], %s206_s25, %s206_s25, %s207_s26  }
  0x13   :  { %s208_s29 = smov [#allocation5]   ;;  %s155_s7 = scalar_lea.hbm %s293_s1, 256 }
  0x14   :  { %s29_s30 = sshll.u32 %s208_s29, 4  ;;  %p156_p8 = scmp.ne.s32.totalorder %s293_s1, %s155_s7  ;;  %s30_s30 = int_to_ptr.vmem [resolvable:$true] %s29_s30 }
  0x15   :  { %p159_p9 = scmp.lt.u32.totalorder %s155_s7, %s293_s1 }
  0x17   :  { %p161_p10 = pnand %p159_p9, %p156_p8 }
  0x19   :  { %164 = shalt.err (!%p161_p10)
}
  0x1a   :  { %s165_s12 = scalar_lea.vmem %s30_s30, 256  ;;  %p170_p12 = scmp.lt.s32.totalorder %s30_s30, %s30_s30 }
  0x1b   :  { %p166_p11 = scmp.ne.s32.totalorder %s30_s30, %s165_s12  ;;  %p171_p13 = scmp.lt.s32.totalorder %s165_s12, %s165_s12 }
  0x1d   :  { %p172_p0 = por %p171_p13, %p170_p12 }
  0x1f   :  { %p173_p1 = pnand %p172_p0, %p166_p11 }
  0x21   :  { %176 = shalt.err (!%p173_p1)
}
  0x22   :  { %35 = dma.hbm_to_vmem [thread:$0]  %s293_s1, 256, %s30_s30, [#allocation6], %s206_s25, %s206_s25, %s207_s26  }
  0x23   :  { %199 = dma.done.wait [#allocation3], 256  }
  0x24   :  { %200 = vsyncadd [#allocation3], 4294967040 }
  0x25   :  { %201 = dma.done.wait [#allocation6], 256  }
  0x26   :  { %202 = vsyncadd [#allocation6], 4294967040  ;;  %v46_v0 = vld [vmem:[#allocation2] sm:$0xff]  ;;  %v48_v1 = vld [vmem:[#allocation5] sm:$0xff]  ;;  %vm54_vm0 = vcmask 261120   ;;  %s209_s17 = smov [#allocation7]  }
  0x27   :  { %v47_v2 = vld [vmem:[#allocation2 + $0x8] sm:$0xff]  ;;  %v50_v3 = vadd.f32 %v48_v1, %v46_v0  ;;  %v49_v4 = vld [vmem:[#allocation5 + $0x8] sm:$0xff]  ;;  %v122_v28 = vld [vmem:[%s294_s2] ss:$0 sm:$0xff]  ;;  %s109_s18 = sshll.u32 %s209_s17, 4  ;;  %s110_s18 = int_to_ptr.vmem [resolvable:$true] %s109_s18 }
  0x28   :  { %v51_v5 = vadd.f32 %v49_v4, %v47_v2  ;;  %v123_v30 = vld [vmem:[%s295_s3] ss:$0 sm:$0xff]  ;;  %s177_s2 = scalar_lea.vmem %s110_s18, 256  ;;  %p182_p3 = scmp.lt.s32.totalorder %s110_s18, %s110_s18 }
  0x29   :  { %v55_v6 = vsel %vm54_vm0, %v50_v3, 0.0  ;;  %v64_v7 = vmul.f32 %v50_v3, %v50_v3  ;;  %p178_p2 = scmp.ne.s32.totalorder %s110_s18, %s177_s2  ;;  %p183_p4 = scmp.lt.s32.totalorder %s177_s2, %s177_s2 }
  0x2a   :  { %56 = vadd.xlane.f32.xlu0 %v55_v6  ;;  %v65_v8 = vmul.f32 %v51_v5, %v51_v5  ;;  %v58_v10 = vsel %vm54_vm0, %v51_v5, 0.0 }
  0x2b   :  { %v66_v9 = vsel %vm54_vm0, %v64_v7, 0.0  ;;  %p184_p5 = por %p183_p4, %p182_p3 }
  0x2c   :  { %67 = vadd.xlane.f32.xlu1 %v66_v9  ;;  %v69_v11 = vsel %vm54_vm0, %v65_v8, 0.0 }
  0x2d   :  { %p185_p6 = pnand %p184_p5, %p178_p2 }
  0x2e   :  { %59 = vadd.xlane.f32.xlu0 %v58_v10 }
  0x30   :  { %70 = vadd.xlane.f32.xlu1 %v69_v11 }
  0xb7   :  { %v57_v12 = vpop.xlane.xlu0 %56 }
  0xb8   :  { %v62_v13 = vmul.f32 0.03125, %v57_v12 }
  0xb9   :  { %v68_v14 = vpop.xlane.xlu1 %67 }
  0xba   :  { %v74_v15 = vmul.f32 %v62_v13, %v62_v13  ;;  %v72_v16 = vmul.f32 0.03125, %v68_v14  ;;  %v82_v26 = vsub.f32 %v50_v3, %v62_v13 }
  0xbb   :  { %v60_v17 = vpop.xlane.xlu0 %59 }
  0xbc   :  { %v76_v18 = vsub.f32 %v72_v16, %v74_v15  ;;  %v63_v19 = vmul.f32 0.03125, %v60_v17 }
  0xbd   :  { %v71_v20 = vpop.xlane.xlu1 %70 }
  0xbe   :  { %v78_v21 = vadd.f32 1e-05, %v76_v18  ;;  %v75_v22 = vmul.f32 %v63_v19, %v63_v19  ;;  %v73_v23 = vmul.f32 0.03125, %v71_v20  ;;  %v83_v31 = vsub.f32 %v51_v5, %v63_v19 }
  0xc0   :  { %129 = vrsqrt.f32 %v78_v21  ;;  %v77_v24 = vsub.f32 %v73_v23, %v75_v22 }
  0xc2   :  { %v79_v25 = vadd.f32 1e-05, %v77_v24 }
  0xc4   :  { %131 = vrsqrt.f32 %v79_v25 }
  0xca   :  { %v130_v27 = vpop.eup %129 }
  0xcb   :  { %v84_v29 = vmul.f32 %v130_v27, %v82_v26 }
  0xcd   :  { %v92_v32 = vmul.f32 %v122_v28, %v84_v29 }
  0xce   :  { %v132_v33 = vpop.eup %131 }
  0xcf   :  { %v85_v34 = vmul.f32 %v132_v33, %v83_v31  ;;  %v100_v35 = vadd.f32 %v123_v30, %v92_v32 }
  0xd1   :  { %v93_v36 = vmul.f32 %v122_v28, %v85_v34  ;;  %102 = vst.msk [vmem:[#allocation7] sm:$0xff] %vm54_vm0, %v100_v35 }
  0xd3   :  { %v101_v37 = vadd.f32 %v123_v30, %v93_v36 }
  0xd5   :  { %103 = vst.msk [vmem:[#allocation7 + $0x8] sm:$0xff] %vm54_vm0, %v101_v37 }
  0xd6   :  { %188 = shalt.err (!%p185_p6)
}
  0xd7   :  { %s189_s20 = scalar_lea.hbm %s296_s4, 256 }
  0xd8   :  { %p190_p7 = scmp.ne.s32.totalorder %s296_s4, %s189_s20  ;;  %p193_p8 = scmp.lt.u32.totalorder %s189_s20, %s296_s4 }
  0xda   :  { %p195_p9 = pnand %p193_p8, %p190_p7 }
  0xdc   :  { %198 = shalt.err (!%p195_p9)
}
  0xdd   :  { %115 = dma.vmem_to_hbm [thread:$0]  %s110_s18, 256, %s296_s4, [#allocation4], %s206_s25, %s206_s25, %s207_s26  }
  0xde   :  { %203 = dma.done.wait [#allocation4], 256  }
  0xdf   :  { %204 = vsyncadd [#allocation4], 4294967040 }
  0xe0   :  { %119 = vsyncpa [#allocation3], 1 }
  0xe1   :  { %120 = vsyncpa [#allocation6], 1 }
  0xe2   :  { %121 = vsyncpa [#allocation4], 1 }

</bundles_post_ra>
